<compile_context>
chip_gen: v6e
topology: v6e:2x2x1
jax: 0.10.0
libtpu: 0.0.40
codegen_flags: <defaults>
</compile_context>

<pallas_src>
import functools

import jax
import jax.numpy as jnp
from jax import lax
from jax.experimental import pallas as pl
from jax.experimental.pallas import tpu as pltpu

_HALO = 128  # lane-aligned halo width; requires kernel_size - 1 <= 128


def _bsconv1d_kernel(x_ref, xh_ref, wpw_ref, bpw_ref, wdw_ref, bdw_ref, o_ref,
                     *, kernel_size: int, padding: int, t_in: int, t_tile: int):
    """One grid step = (batch element b, time tile j).

    x_ref   : (1, C_in, TT)        current time tile of zero-padded x
    xh_ref  : (1, C_in, 128)       halo: first 128 cols of the next tile
    wpw_ref : (C_out, C_in)        pointwise weight
    bpw_ref : (C_out, 1)           pointwise bias
    wdw_ref : (C_out, K)           depthwise weight
    bdw_ref : (C_out, 1)           depthwise bias
    o_ref   : (1, C_out, TT)
    """
    j = pl.program_id(1)
    win = t_tile + _HALO

    # ---- pointwise conv (1x1) == matmul over channels (MXU, f32 accumulate) ----
    x_win = jnp.concatenate([x_ref[0], xh_ref[0]], axis=-1)          # (C_in, TT+128)
    y = jnp.dot(wpw_ref[...], x_win,
                preferred_element_type=jnp.float32)                  # (C_out, TT+128)

    # Columns of the conceptual zero-padded activation y_pad (length T + 2P):
    # valid (real) columns are [P, P + T); outside them y_pad must be exactly 0,
    # so add the pointwise bias only on valid columns (x is already 0 there).
    col = j * t_tile + lax.broadcasted_iota(jnp.int32, (1, win), 1)
    valid = (col >= padding) & (col < padding + t_in)
    y = jnp.where(valid, y + bpw_ref[...].astype(jnp.float32), 0.0)

    # ---- depthwise conv: static unrolled tap loop on the VPU ----
    wdw = wdw_ref[...].astype(jnp.float32)
    acc = wdw[:, 0:1] * y[:, :t_tile]
    for k in range(1, kernel_size):
        acc = acc + wdw[:, k:k + 1] * y[:, k:k + t_tile]
    acc = acc + bdw_ref[...].astype(jnp.float32)

    o_ref[0] = acc.astype(o_ref.dtype)


def bsconv1d(x, w_pw, b_pw, w_dw, b_dw, *, kernel_size: int, padding: int,
             t_tile: int = 512):
    """x: (B, C_in, T); w_pw: (C_out, C_in); b_pw: (C_out,);
    w_dw: (C_out, K); b_dw: (C_out,).  Returns (B, C_out, T + 2P - K + 1)."""
    B, C_in, T = x.shape
    C_out = w_pw.shape[0]
    T_out = T + 2 * padding - kernel_size + 1
    assert T_out >= 1, "kernel_size too large for T + 2*padding"
    assert kernel_size - 1 <= _HALO, "kernel_size - 1 must be <= 128"

    # 128-aligned time tile, no larger than the (rounded-up) output length.
    t_tile = max(128, (t_tile // 128) * 128)
    t_tile = min(t_tile, ((T_out + 127) // 128) * 128)
    n_t = pl.cdiv(T_out, t_tile)
    halo_stride = t_tile // 128

    # Zero-pad x in HBM once: P leading zeros (depthwise padding) + tail zeros so
    # every tile's halo block is in bounds.  L_pad = n_t*TT + 128.
    L_pad = n_t * t_tile + _HALO
    x_p = jnp.pad(x, ((0, 0), (0, 0), (padding, L_pad - T - padding)))

    b_pw2 = b_pw.reshape(C_out, 1)
    b_dw2 = b_dw.reshape(C_out, 1)

    kernel = functools.partial(_bsconv1d_kernel,
                               kernel_size=kernel_size,
                               padding=padding,
                               t_in=T,
                               t_tile=t_tile)

    itemsize = jnp.dtype(x.dtype).itemsize
    # Rough VMEM budget: double-buffered x (main + halo) and out blocks,
    # plus f32 in-kernel temporaries and the (tiny) weights.
    block_bytes = (2 * C_in * (t_tile + _HALO) * itemsize
                   + 2 * C_out * t_tile * itemsize
                   + 3 * C_out * (t_tile + _HALO) * 4
                   + C_out * (C_in + kernel_size + 2) * 4)
    vmem_limit = int(min(max(2 * block_bytes, 32 * 1024 * 1024), 64 * 1024 * 1024))

    cost = pl.CostEstimate(
        flops=2 * B * C_out * C_in * T + 2 * B * C_out * kernel_size * T_out,
        transcendentals=0,
        bytes_accessed=int((x.size + B * C_out * T_out) * itemsize
                           + (w_pw.size + w_dw.size + b_pw.size + b_dw.size) * 4),
    )

    out_padded = pl.pallas_call(
        kernel,
        out_shape=jax.ShapeDtypeStruct((B, C_out, n_t * t_tile), x.dtype),
        grid_spec=pltpu.PrefetchScalarGridSpec(
            num_scalar_prefetch=0,
            grid=(B, n_t),
            in_specs=[
                # current time tile of padded x
                pl.BlockSpec((1, C_in, t_tile), lambda b, j: (b, 0, j)),
                # 128-wide halo = first 128 columns of the next tile
                pl.BlockSpec((1, C_in, _HALO),
                             lambda b, j: (b, 0, (j + 1) * halo_stride)),
                pl.BlockSpec((C_out, C_in), lambda b, j: (0, 0)),
                pl.BlockSpec((C_out, 1), lambda b, j: (0, 0)),
                pl.BlockSpec((C_out, kernel_size), lambda b, j: (0, 0)),
                pl.BlockSpec((C_out, 1), lambda b, j: (0, 0)),
            ],
            out_specs=pl.BlockSpec((1, C_out, t_tile), lambda b, j: (b, 0, j)),
        ),
        compiler_params=pltpu.CompilerParams(
            dimension_semantics=("parallel", "parallel"),
            vmem_limit_bytes=vmem_limit),
        cost_estimate=cost,
    )(x_p, x_p, w_pw, b_pw2, w_dw, b_dw2)

    # TODO(synk): for very small T_out one could also fold batch into the lane
    # axis for even denser stores; kept per-(b, time-tile) grid for simplicity.
    return out_padded[:, :, :T_out]


def _reference(x, w_pw, b_pw, w_dw, b_dw, *, kernel_size, padding):
    """Pure-JAX reference using lax convolutions (matches torch semantics)."""
    C_out = w_pw.shape[0]
    y = lax.conv_general_dilated(
        x, w_pw[:, :, None], window_strides=(1,), padding=[(0, 0)],
        dimension_numbers=("NCH", "OIH", "NCH"))
    y = y + b_pw[None, :, None]
    z = lax.conv_general_dilated(
        y, w_dw[:, None, :], window_strides=(1,), padding=[(padding, padding)],
        dimension_numbers=("NCH", "OIH", "NCH"), feature_group_count=C_out)
    return z + b_dw[None, :, None]


if __name__ == "__main__":
    key = jax.random.PRNGKey(0)
    k1, k2, k3, k4, k5, k6 = jax.random.split(key, 6)

    B, C_in, C_out = 2, 4, 8
    kernel_size, padding = 5, 2

    # Parameter shapes implied by nn.Conv1d:
    #   pointwise.weight: (C_out, C_in, 1) -> stored as (C_out, C_in)
    #   pointwise.bias:   (C_out,)
    #   depthwise.weight: (C_out, 1, K)    -> stored as (C_out, K)
    #   depthwise.bias:   (C_out,)
    w_pw = 0.3 * jax.random.normal(k2, (C_out, C_in), jnp.float32)
    b_pw = 0.1 * jax.random.normal(k3, (C_out,), jnp.float32)
    w_dw = 0.3 * jax.random.normal(k4, (C_out, kernel_size), jnp.float32)
    b_dw = 0.1 * jax.random.normal(k5, (C_out,), jnp.float32)

    # Case 1: tiny time axis (single time tile).
    T1 = 16
    x1 = jax.random.normal(k1, (B, C_in, T1), jnp.float32)
    out1 = jax.block_until_ready(
        bsconv1d(x1, w_pw, b_pw, w_dw, b_dw,
                 kernel_size=kernel_size, padding=padding))
    ref1 = _reference(x1, w_pw, b_pw, w_dw, b_dw,
                      kernel_size=kernel_size, padding=padding)
    assert out1.shape == (B, C_out, T1 + 2 * padding - kernel_size + 1), out1.shape
    assert jnp.allclose(out1, ref1, atol=1e-4, rtol=1e-4), "case1 mismatch"

    # Case 2: multi-tile time axis (exercises halo blocks + boundary masking).
    T2 = 300
    x2 = jax.random.normal(k6, (B, C_in, T2), jnp.float32)
    out2 = jax.block_until_ready(
        bsconv1d(x2, w_pw, b_pw, w_dw, b_dw,
                 kernel_size=kernel_size, padding=padding, t_tile=128))
    ref2 = _reference(x2, w_pw, b_pw, w_dw, b_dw,
                      kernel_size=kernel_size, padding=padding)
    assert out2.shape == (B, C_out, T2 + 2 * padding - kernel_size + 1), out2.shape
    assert jnp.allclose(out2, ref2, atol=1e-4, rtol=1e-4), "case2 mismatch"

    print("KERNEL_OK")
</pallas_src>

<mosaic_0001>
module attributes {stable_mosaic.version = 11 : i64} {
  func.func @_bsconv1d_kernel(%arg0: i32, %arg1: i32, %arg2: memref<1x4x128xf32, #tpu.memory_space<vmem>>, %arg3: memref<1x4x128xf32, #tpu.memory_space<vmem>>, %arg4: memref<8x4xf32, #tpu.memory_space<vmem>>, %arg5: memref<8x1xf32, #tpu.memory_space<vmem>>, %arg6: memref<8x5xf32, #tpu.memory_space<vmem>>, %arg7: memref<8x1xf32, #tpu.memory_space<vmem>>, %arg8: memref<1x8x128xf32, #tpu.memory_space<vmem>>) attributes {dimension_semantics = [#tpu.dimension_semantics<parallel>, #tpu.dimension_semantics<parallel>], iteration_bounds = array<i64: 2, 1>, scalar_prefetch = 0 : i64, scratch_operands = 0 : i64, tpu.core_type = #tpu.core_type<tc>, window_params = [{transform_indices = @transform_0, window_bounds = array<i64: 1, 4, 128>}, {transform_indices = @transform_1, window_bounds = array<i64: 1, 4, 128>}, {pipeline_mode = #tpu.pipeline_mode<synchronous>, transform_indices = @transform_2, window_bounds = array<i64: 8, 4>}, {pipeline_mode = #tpu.pipeline_mode<synchronous>, transform_indices = @transform_3, window_bounds = array<i64: 8, 1>}, {pipeline_mode = #tpu.pipeline_mode<synchronous>, transform_indices = @transform_4, window_bounds = array<i64: 8, 5>}, {pipeline_mode = #tpu.pipeline_mode<synchronous>, transform_indices = @transform_5, window_bounds = array<i64: 8, 1>}, {transform_indices = @transform_6, window_bounds = array<i64: 1, 8, 128>}]} {
    %c0 = arith.constant 0 : index
    %c0_0 = arith.constant 0 : index
    %c0_1 = arith.constant 0 : index
    %0 = vector.load %arg2[%c0, %c0_0, %c0_1] : memref<1x4x128xf32, #tpu.memory_space<vmem>>, vector<1x4x128xf32>
    %1 = vector.shape_cast %0 : vector<1x4x128xf32> to vector<4x128xf32>
    %c0_2 = arith.constant 0 : index
    %c0_3 = arith.constant 0 : index
    %c0_4 = arith.constant 0 : index
    %2 = vector.load %arg3[%c0_2, %c0_3, %c0_4] : memref<1x4x128xf32, #tpu.memory_space<vmem>>, vector<1x4x128xf32>
    %3 = vector.shape_cast %2 : vector<1x4x128xf32> to vector<4x128xf32>
    %4 = tpu.concatenate %1, %3 in 1 : vector<4x128xf32>, vector<4x128xf32> -> vector<4x256xf32>
    %c0_5 = arith.constant 0 : index
    %c0_6 = arith.constant 0 : index
    %5 = vector.load %arg4[%c0_5, %c0_6] : memref<8x4xf32, #tpu.memory_space<vmem>>, vector<8x4xf32>
    %cst = arith.constant dense<0.000000e+00> : vector<8x256xf32>
    %6 = tpu.matmul %5, %4, %cst {dimension_numbers = #tpu.dot_dimension_numbers<[1], [0], [0], [1], [0, 0, 1, 1], [], []>} : vector<8x4xf32>, vector<4x256xf32>, vector<8x256xf32> -> vector<8x256xf32>
    %c128_i32 = arith.constant 128 : i32
    %7 = arith.muli %arg1, %c128_i32 : i32
    %8 = tpu.iota {dimensions = array<i32: 1>} : vector<1x256xi32>
    %9 = vector.broadcast %7 : i32 to vector<1x256xi32>
    %10 = arith.addi %9, %8 : vector<1x256xi32>
    %c2_i32 = arith.constant 2 : i32
    %11 = vector.broadcast %c2_i32 : i32 to vector<1x256xi32>
    %12 = arith.cmpi sge, %10, %11 : vector<1x256xi32>
    %c18_i32 = arith.constant 18 : i32
    %13 = vector.broadcast %c18_i32 : i32 to vector<1x256xi32>
    %14 = arith.cmpi slt, %10, %13 : vector<1x256xi32>
    %15 = arith.andi %12, %14 : vector<1x256xi1>
    %c0_7 = arith.constant 0 : index
    %c0_8 = arith.constant 0 : index
    %16 = vector.load %arg5[%c0_7, %c0_8] : memref<8x1xf32, #tpu.memory_space<vmem>>, vector<8x1xf32>
    %17 = vector.broadcast %16 : vector<8x1xf32> to vector<8x256xf32>
    %18 = arith.addf %6, %17 : vector<8x256xf32>
    %cst_9 = arith.constant 0.000000e+00 : f32
    %19 = vector.shape_cast %15 : vector<1x256xi1> to vector<1x256xi1>
    %20 = vector.broadcast %19 : vector<1x256xi1> to vector<8x256xi1>
    %21 = vector.broadcast %cst_9 : f32 to vector<8x256xf32>
    %22 = arith.select %20, %18, %21 : vector<8x256xi1>, vector<8x256xf32>
    %c0_10 = arith.constant 0 : index
    %c0_11 = arith.constant 0 : index
    %23 = vector.load %arg6[%c0_10, %c0_11] : memref<8x5xf32, #tpu.memory_space<vmem>>, vector<8x5xf32>
    %24 = vector.extract_strided_slice %23 {offsets = [0, 0], sizes = [8, 1], strides = [1, 1]} : vector<8x5xf32> to vector<8x1xf32>
    %25 = vector.extract_strided_slice %22 {offsets = [0, 0], sizes = [8, 128], strides = [1, 1]} : vector<8x256xf32> to vector<8x128xf32>
    %26 = vector.broadcast %24 : vector<8x1xf32> to vector<8x128xf32>
    %27 = arith.mulf %26, %25 : vector<8x128xf32>
    %28 = vector.extract_strided_slice %23 {offsets = [0, 1], sizes = [8, 1], strides = [1, 1]} : vector<8x5xf32> to vector<8x1xf32>
    %29 = vector.extract_strided_slice %22 {offsets = [0, 1], sizes = [8, 128], strides = [1, 1]} : vector<8x256xf32> to vector<8x128xf32>
    %30 = vector.broadcast %28 : vector<8x1xf32> to vector<8x128xf32>
    %31 = arith.mulf %30, %29 : vector<8x128xf32>
    %32 = arith.addf %27, %31 : vector<8x128xf32>
    %33 = vector.extract_strided_slice %23 {offsets = [0, 2], sizes = [8, 1], strides = [1, 1]} : vector<8x5xf32> to vector<8x1xf32>
    %34 = vector.extract_strided_slice %22 {offsets = [0, 2], sizes = [8, 128], strides = [1, 1]} : vector<8x256xf32> to vector<8x128xf32>
    %35 = vector.broadcast %33 : vector<8x1xf32> to vector<8x128xf32>
    %36 = arith.mulf %35, %34 : vector<8x128xf32>
    %37 = arith.addf %32, %36 : vector<8x128xf32>
    %38 = vector.extract_strided_slice %23 {offsets = [0, 3], sizes = [8, 1], strides = [1, 1]} : vector<8x5xf32> to vector<8x1xf32>
    %39 = vector.extract_strided_slice %22 {offsets = [0, 3], sizes = [8, 128], strides = [1, 1]} : vector<8x256xf32> to vector<8x128xf32>
    %40 = vector.broadcast %38 : vector<8x1xf32> to vector<8x128xf32>
    %41 = arith.mulf %40, %39 : vector<8x128xf32>
    %42 = arith.addf %37, %41 : vector<8x128xf32>
    %43 = vector.extract_strided_slice %23 {offsets = [0, 4], sizes = [8, 1], strides = [1, 1]} : vector<8x5xf32> to vector<8x1xf32>
    %44 = vector.extract_strided_slice %22 {offsets = [0, 4], sizes = [8, 128], strides = [1, 1]} : vector<8x256xf32> to vector<8x128xf32>
    %45 = vector.broadcast %43 : vector<8x1xf32> to vector<8x128xf32>
    %46 = arith.mulf %45, %44 : vector<8x128xf32>
    %47 = arith.addf %42, %46 : vector<8x128xf32>
    %c0_12 = arith.constant 0 : index
    %c0_13 = arith.constant 0 : index
    %48 = vector.load %arg7[%c0_12, %c0_13] : memref<8x1xf32, #tpu.memory_space<vmem>>, vector<8x1xf32>
    %49 = vector.broadcast %48 : vector<8x1xf32> to vector<8x128xf32>
    %50 = arith.addf %47, %49 : vector<8x128xf32>
    %c0_14 = arith.constant 0 : index
    %c0_15 = arith.constant 0 : index
    %c0_16 = arith.constant 0 : index
    %51 = vector.load %arg8[%c0_14, %c0_15, %c0_16] : memref<1x8x128xf32, #tpu.memory_space<vmem>>, vector<1x8x128xf32>
    %52 = vector.shape_cast %51 : vector<1x8x128xf32> to vector<8x128xf32>
    %53 = vector.shape_cast %50 : vector<8x128xf32> to vector<1x8x128xf32>
    tpu.vector_store %arg8[%c0_14, %c0_15, %c0_16], %53 {strides = array<i32>} : memref<1x8x128xf32, #tpu.memory_space<vmem>>, vector<1x8x128xf32>,
    return
  }
  func.func @transform_0(%arg0: i32, %arg1: i32) -> (i32, i32, i32) {
    %c0_i32 = arith.constant 0 : i32
    %c0_i32_0 = arith.constant 0 : i32
    return %arg0, %c0_i32, %arg1 : i32, i32, i32
  }
  func.func @transform_1(%arg0: i32, %arg1: i32) -> (i32, i32, i32) {
    %c1_i32 = arith.constant 1 : i32
    %0 = arith.addi %arg1, %c1_i32 : i32
    %c1_i32_0 = arith.constant 1 : i32
    %1 = arith.muli %0, %c1_i32_0 : i32
    %c0_i32 = arith.constant 0 : i32
    %c0_i32_1 = arith.constant 0 : i32
    return %arg0, %c0_i32, %1 : i32, i32, i32
  }
  func.func @transform_2(%arg0: i32, %arg1: i32) -> (i32, i32) {
    %c0_i32 = arith.constant 0 : i32
    %c0_i32_0 = arith.constant 0 : i32
    %c0_i32_1 = arith.constant 0 : i32
    return %c0_i32, %c0_i32_0 : i32, i32
  }
  func.func @transform_3(%arg0: i32, %arg1: i32) -> (i32, i32) {
    %c0_i32 = arith.constant 0 : i32
    %c0_i32_0 = arith.constant 0 : i32
    %c0_i32_1 = arith.constant 0 : i32
    return %c0_i32, %c0_i32_0 : i32, i32
  }
  func.func @transform_4(%arg0: i32, %arg1: i32) -> (i32, i32) {
    %c0_i32 = arith.constant 0 : i32
    %c0_i32_0 = arith.constant 0 : i32
    %c0_i32_1 = arith.constant 0 : i32
    return %c0_i32, %c0_i32_0 : i32, i32
  }
  func.func @transform_5(%arg0: i32, %arg1: i32) -> (i32, i32) {
    %c0_i32 = arith.constant 0 : i32
    %c0_i32_0 = arith.constant 0 : i32
    %c0_i32_1 = arith.constant 0 : i32
    return %c0_i32, %c0_i32_0 : i32, i32
  }
  func.func @transform_6(%arg0: i32, %arg1: i32) -> (i32, i32, i32) {
    %c0_i32 = arith.constant 0 : i32
    %c0_i32_0 = arith.constant 0 : i32
    return %arg0, %c0_i32, %arg1 : i32, i32, i32
  }
}

</mosaic_0001>

<bundles_post_ra>
// kernel: tpu_custom_call.1
= control target key start
LH: loop header
LB: loop body
LE: loop exit
PB: predicated region body
PF: predicated region fallthrough
CT: control target
= control target key end

     0   :  { %11 = vsyncpa [#allocation3], 0  ;;  %s1033_s0 = inlined_call_operand.vmem [shape: f32[2,4,256], index: 0, kind: input, shape index: {}]   ;;  %s1034_s1 = inlined_call_operand.hbm [shape: f32[2,4,256], index: 1, kind: input, shape index: {}]   ;;  %s1035_s2 = inlined_call_operand.vmem [shape: f32[8,4], index: 2, kind: input, shape index: {}]   ;;  %s1036_s3 = inlined_call_operand.vmem [shape: f32[8,1], index: 3, kind: input, shape index: {}]   ;;  %s1037_s4 = inlined_call_operand.vmem [shape: f32[8,5], index: 4, kind: input, shape index: {}]   ;;  %s1038_s5 = inlined_call_operand.vmem [shape: f32[8,1], index: 5, kind: input, shape index: {}]   ;;  %s1039_s6 = inlined_call_operand.hbm [shape: f32[2,8,128], index: 6, kind: output, shape index: {}]  }
   0x1   :  { %13 = vsyncpa [#allocation3 + $0x1], 0 }
   0x2   :  { %14 = vsyncpa [#allocation4], 0 }
   0x3   :  { %16 = vsyncpa [#allocation4 + $0x1], 0  ;;  %s881_s21 = smov 0   ;;  %s883_s22 = smov 0  }
   0x4   :  { %s885_s23 = smov 0   ;;  %s887_s24 = smov 0  }
   0x5   :  { %s889_s25 = smov 0   ;;  %s891_s26 = smov 0  }
   0x6 LB: > { %s624_s27 = sadd.s32 4294967295, %s832_s26   ;;  %s625_s28 = sadd.s32 4294967294, %s832_s26   ;;  %s832_s26 = sphi %s891_s26, %s22_s26   ;;  %s828_s25 = sphi %s889_s25, %s1051_s25   ;;  %s824_s24 = sphi %s887_s24, %s1050_s24   ;;  %s820_s23 = sphi %s885_s23, %s1049_s23   ;;  %s816_s22 = sphi %s883_s22, %s1048_s22   ;;  %s812_s21 = sphi %s881_s21, %s1047_s21  }
   0x7   : > { %s34_s29 = sadd.s32 1, %s828_s25  ;;  %s73_s30 = sadd.s32 1, %s820_s23 }
   0x8   : > { %p36_p0 = scmp.ge.s32.totalorder %s34_s29, 2  ;;  %p80_p1 = scmp.ne.s32.totalorder %s820_s23, %s816_s22 }
   0x9   : > { %p81_p2 = scmp.eq.s32.totalorder %s832_s26, 0  ;;  %p86_p3 = scmp.ne.s32.totalorder %s816_s22, %s812_s21 }
   0xa   : > { %s1053_s29 = smov (%p36_p0, %s34_s29), 0  ;;  %p87_p5 = scmp.eq.s32.totalorder %s624_s27, 0 }
   0xb   : > { %p922_p4 = por %p81_p2, %p80_p1  ;;  %s68_s8 = ssub.s32 %s828_s25, %s1053_s29 }
   0xc   : > { %p196_p6 = scmp.eq.s32.totalorder %s624_s27, 1  ;;  %p71_p7 = scmp.eq.s32.totalorder %s68_s8, 0 }
   0xd   : > { %p928_p8 = por %p87_p5, %p86_p3  ;;  %p202_p10 = scmp.eq.s32.totalorder %s625_s28, 1 }
   0xe   : > { %p932_p9 = por %p196_p6, %p80_p1  ;;  %p657_p13 = scmp.lt.s32.totalorder %s832_s26, 2 }
   0xf   : > { %s937_s11 = scalar_select %p71_p7, %s820_s23, %s73_s30  }
  0x10   : > { %p939_p11 = por %p202_p10, %p86_p3  ;;  %s245_s13 = sand.u32 1, %s820_s23  }
  0x11   : > { %s628_s14 = sshll.u32 %s245_s13, 2  ;;  %s643_s15 = sshll.u32 %s828_s25, 7 }
  0x12   : > { %s1043_s12 = scalar_select %p939_p11, 1, 0 }
  0x13   : > { %s558_s18 = scalar_lea.hbm %s1034_s1, %s643_s15  ;;  %s249_s19 = scalar_lea.vmem [#allocation2], %s628_s14 }
  0x14   : > { %s259_s20 = sshll.u32 %s249_s19, 4  ;;  %s559_s27 = scalar_lea.hbm %s558_s18, 64  ;;  %s260_s20 = int_to_ptr.vmem [resolvable:$true] %s259_s20 }
  0x15   : > { %p952_p0 = pnand %p657_p13, %p922_p4  ;;  %p631_p1 = scmp.ge.s32.totalorder %s832_s26, 1 }
  0x16   : > { %p264_p2 = scmp.lt.s32.totalorder %s832_s26, 3  ;;  %s246_s30 = scalar_lea.sflag [#allocation3], %s245_s13 }
  0x17   : > { %p725_p3 = pneg %p952_p0  ;;  %s736_s8 = scalar_lea.vmem %s260_s20, 64 }
  0x18   : > { %p737_p5 = scmp.ne.s32.totalorder %s260_s20, %s736_s8  ;;  %s834_s15 = smov [#allocation2]  }
  0x19   : > { %s741_s14 = sshll.u32 %s834_s15, 4  ;;  %s742_s14 = int_to_ptr.vmem [resolvable:$false] %s741_s14 }
  0x1a   : > { %p739_p6 = pnand %p737_p5, %p725_p3  ;;  %s743_s16 = scalar_lea.vmem %s742_s14, 128 }
  0x1b   : > { %p744_p10 = scmp.lt.s32.totalorder %s260_s20, %s742_s14  ;;  %p745_p12 = scmp.lt.s32.totalorder %s743_s16, %s736_s8 }
  0x1c   : > { %p740_p7 = pneg %p739_p6 }
  0x1d   : > { %p746_p4 = por %p745_p12, %p744_p10 }
  0x1f   : > { %p747_p13 = pnand %p746_p4, %p740_p7 }
  0x21   : > { %750 = shalt.err (!%p747_p13)
}
  0x22   : > { %652 = dma.hbm_to_vmem [thread:$0]  (!%p952_p0), %s559_s27, 64, %s260_s20, %s246_s30  }
  0x23   : > { %p265_p11 = pnand %p631_p1, %p264_p2 }
  0x24   : > { %s967_s7 = sand.u32 (!%p265_p11), 1, %s816_s22  }
  0x25   : > { %268 = sbr.rel (%p265_p11) target bundleno = 390 (0x186), region = 44  ;;  %s632_s13 = sshll.u32 (!%p265_p11), %s967_s7, 2 }
  0x26   : > { %s271_s17 = scalar_lea.sflag (!%p265_p11), [#allocation3], %s967_s7  ;;  %s274_s18 = scalar_lea.vmem (!%p265_p11), [#allocation2], %s632_s13 }
  0x2a   : > { %803 = dma.done.wait (%p928_p8), %s271_s17, 64  }
  0x2b   : > { %805 = vsyncadd (%p928_p8), %s271_s17, 4294967232  ;;  %p311_p12 = scmp.lt.s32.totalorder %s824_s24, 1  ;;  %v835_v0 = vmov 0.0   ;;  %v836_v1 = vmov 0   ;;  %v837_v2 = vmov 2   ;;  %vm346_vm0 = vcmask 1043456  }
  0x2c   : > { %417 = vmatprep.mubr.f32.mxu0 %v835_v0  ;;  %717 = vset.pattern.permute.xlu0 %v836_v1  ;;  %v321_v3 = vld [vmem:[%s274_s18] sm:$0xf]  ;;  %vm342_vm1 = vcmask 31744   ;;  %v838_v8 = vmov 1   ;;  %v839_v9 = vmov 3   ;;  %v840_v10 = vmov 4  }
  0x2d   : > { %s312_s19 = scalar_select %p311_p12, %s824_s24, 1  ;;  %719 = vset.pattern.permute.xlu1 %v837_v2  ;;  %v322_v5 = vld [vmem:[%s1035_s2] sm:$0xff]  ;;  %636 = vmatprep.subr.msk.mxu0 %vm346_vm0, %v321_v3  ;;  %v324_v17 = vlaneseq  ;;  %vm449_vm5 = vcmask 1039360   ;;  %vm465_vm6 = vcmask 1031168   ;;  %vm481_vm7 = vcmask 1022976  }
  0x2e   : > { %v336_v6 = vld [vmem:[%s1036_s3] sm:$0xff]  ;;  %s843_s27 = smov 125   ;;  %s844_s28 = smov 124   ;;  %vm497_vm8 = vcmask 1014784  }
  0x2f   : > { %s644_s20 = sshll.u32 %s312_s19, 3  ;;  %v430_v7 = vld [vmem:[%s1037_s4] sm:$0xff]  ;;  %339 = vperm.xlu0 %717, %v336_v6   ;;  %s841_s19 = smov 127   ;;  %v325_v18 = vand.u32 127, %v324_v17 }
  0x30   : > { %s318_s30 = scalar_lea.vmem %s1033_s0, %s644_s20  ;;  %454 = vperm.xlu1 %719, %v430_v7   ;;  %v501_v11 = vld [vmem:[%s1038_s5] sm:$0xff]  ;;  %s842_s20 = smov 126  }
  0x31   : > { %v320_v4 = vld [vmem:[%s318_s30] sm:$0xf]  ;;  %vm330_vm2 = vcmp.ge.s32.totalorder %v325_v18, 2  ;;  %vm332_vm3 = vcmp.lt.s32.totalorder %v325_v18, 18  ;;  %s633_s30 = sshll.u32 %s967_s7, 3  ;;  %s640_s9 = sshll.u32 %s824_s24, 7 }
  0x32   : > { %637 = vmatpush1.msk.msra.mxu0 %vm346_vm0, %v320_v4  ;;  %vm334_vm4 = vmand %vm330_vm2, %vm332_vm3  ;;  %s310_s8 = scalar_lea.vmem [#allocation5], %s633_s30  ;;  %s522_s13 = scalar_lea.hbm %s1039_s6, %s640_s9 }
  0x33   : > { %638 = vmatmul.mubr.msk.f32.vlgmr.msra.gmra.mxu0 %vm342_vm1, %v322_v5  ;;  %718 = vset.pattern.permute.xlu0 %v838_v8  ;;  %s524_s15 = sshll.u32 %s310_s8, 4  ;;  %s510_s17 = scalar_lea.sflag [#allocation4], %s967_s7  ;;  %s525_s15 = int_to_ptr.vmem [resolvable:$true] %s524_s15 }
  0x34   : > { %438 = vperm.xlu0 %718, %v430_v7   ;;  %720 = vset.pattern.permute.xlu1 %v839_v9  ;;  %s752_s18 = scalar_lea.vmem %s525_s15, 128 }
  0x35   : > { %470 = vperm.xlu1 %720, %v430_v7   ;;  %p753_p8 = scmp.ne.s32.totalorder %s525_s15, %s752_s18 }
  0x37   : > { %p754_p11 = pnand %p753_p8, %p932_p9 }
  0x38   : > { %722 = vset.pattern.permute.xlu0 %v836_v1 }
  0x39   : > { %721 = vset.pattern.permute.xlu1 %v840_v10  ;;  %433 = vperm.xlu0 %722, %v430_v7   ;;  %p755_p0 = pneg %p754_p11 }
  0x3a   : > { %486 = vperm.xlu1 %721, %v430_v7  }
  0x3d   : > { %504 = vperm.xlu0 %722, %v501_v11  }
  0xaa   : > { %v340_v12 = vpop.permute.xlu0 %339 }
  0xab   : > { %v455_v15 = vpop.permute.xlu1 %454 }
  0xac   : > { %v458_v16 = vmul.f32 0.0, %v455_v15 }
  0xaf   : > { %v439_v13 = vpop.permute.xlu0 %438 }
  0xb0   : > { %v442_v14 = vmul.f32 0.0, %v439_v13  ;;  %v471_v22 = vpop.permute.xlu1 %470 }
  0xb1   : > { %v474_v26 = vmul.f32 0.0, %v471_v22 }
  0xb2   : > { %447 = vrot.lane.b32.xlu1 %v442_v14, %s841_s19 }
  0xb4   : > { %v434_v32 = vpop.permute.xlu0 %433 }
  0xb5   : > { %v487_v28 = vpop.permute.xlu1 %486 }
  0xb6   : > { %463 = vrot.lane.b32.xlu1 %v458_v16, %s842_s20  ;;  %v490_v29 = vmul.f32 0.0, %v487_v28 }
  0xb8   : > { %v505_v34 = vpop.permute.xlu0 %504 }
  0xf3   : > { %v419_v19 = vpop.f32.mrf.mxu0 }
  0xf4   : > { %v420_v20 = vadd.f32 %v419_v19, %v340_v12 }
  0xf5   : > { %v421_v21 = vpop.f32.mrf.mxu0 }
  0xf6   : > { %v428_v23 = vsel %vm334_vm4, %v420_v20, 0.0 }
  0xf7   : > { %v457_v24 = vmul.f32 %v455_v15, %v428_v23  ;;  %v441_v25 = vmul.f32 %v439_v13, %v428_v23  ;;  %v473_v27 = vmul.f32 %v471_v22, %v428_v23  ;;  %v489_v30 = vmul.f32 %v487_v28, %v428_v23 }
  0xf8   : > { %v436_v35 = vmul.f32 %v434_v32, %v428_v23 }
  0xf9   : > { %461 = vrot.lane.b32.xlu0 %v457_v24, %s842_s20  ;;  %445 = vrot.lane.b32.xlu1 %v441_v25, %s841_s19  ;;  %s845_s19 = smov [#allocation5]  }
  0xfa   : > { %s756_s20 = sshll.u32 %s845_s19, 4  ;;  %s757_s20 = int_to_ptr.vmem [resolvable:$false] %s756_s20 }
  0xfb   : > { %s758_s24 = scalar_lea.vmem %s757_s20, 256  ;;  %p759_p1 = scmp.lt.s32.totalorder %s525_s15, %s757_s20 }
  0xfc   : > { %p760_p2 = scmp.lt.s32.totalorder %s758_s24, %s752_s18 }
  0xfd   : > { %477 = vrot.lane.b32.xlu0 %v473_v27, %s843_s27  ;;  %479 = vrot.lane.b32.xlu1 %v474_v26, %s843_s27 }
  0xfe   : > { %p761_p3 = por %p760_p2, %p759_p1 }
 0x100   : > { %p762_p5 = pnand %p761_p3, %p755_p0 }
 0x101   : > { %495 = vrot.lane.b32.xlu0 %v490_v29, %s844_s28  ;;  %493 = vrot.lane.b32.xlu1 %v489_v30, %s844_s28 }
 0x124   : > { %v448_v31 = vpop.permute.xlu1 %447 }
 0x128   : > { %v464_v33 = vpop.permute.xlu1 %463 }
 0x16b   : > { %v462_v36 = vpop.permute.xlu0 %461  ;;  %v446_v37 = vpop.permute.xlu1 %445 }
 0x16c   : > { %v450_v38 = vsel %vm449_vm5, %v446_v37, %v448_v31  ;;  %v466_v40 = vsel %vm465_vm6, %v462_v36, %v464_v33 }
 0x16d   : > { %v452_v39 = vadd.f32 %v450_v38, %v436_v35 }
 0x16f   : > { %v478_v41 = vpop.permute.xlu0 %477  ;;  %v480_v42 = vpop.permute.xlu1 %479  ;;  %v468_v43 = vadd.f32 %v466_v40, %v452_v39 }
 0x170   : > { %v482_v44 = vsel %vm481_vm7, %v478_v41, %v480_v42 }
 0x171   : > { %v484_v45 = vadd.f32 %v482_v44, %v468_v43 }
 0x173   : > { %v496_v46 = vpop.permute.xlu0 %495  ;;  %v494_v47 = vpop.permute.xlu1 %493 }
 0x174   : > { %v498_v48 = vsel %vm497_vm8, %v494_v47, %v496_v46 }
 0x175   : > { %v500_v49 = vadd.f32 %v498_v48, %v484_v45 }
 0x177   : > { %v507_v50 = vadd.f32 %v505_v34, %v500_v49 }
 0x179   : > { %508 = vst [vmem:[%s310_s8] sm:$0xff] %v507_v50 }
 0x17a   : > { %765 = shalt.err (!%p762_p5)
}
 0x17b   : > { %s766_s27 = scalar_lea.hbm %s522_s13, 128  ;;  %s770_s30 = scalar_lea.hbm %s1039_s6, 256 }
 0x17c   : > { %p767_p6 = scmp.ne.s32.totalorder %s522_s13, %s766_s27  ;;  %p771_p4 = scmp.lt.s32.totalorder %s522_s13, %s1039_s6 }
 0x17d   : > { %p772_p13 = scmp.lt.s32.totalorder %s770_s30, %s766_s27 }
 0x17e   : > { %p768_p7 = pnand %p767_p6, %p932_p9 }
 0x17f   : > { %p773_p12 = por %p772_p13, %p771_p4 }
 0x180   : > { %p769_p10 = pneg %p768_p7 }
 0x182   : > { %p774_p8 = pnand %p773_p12, %p769_p10 }
 0x184   : > { %777 = shalt.err (!%p774_p8)
}
 0x185   : > { %647 = dma.vmem_to_hbm [thread:$0]  (%p932_p9), %s525_s15, 128, %s522_s13, %s510_s17  }
 0x186 PF: > { %s536_s14 = sand.u32 1, %s812_s21   ;;  %p1045_p11 = scmp.ne.s32.totalorder %s1043_s12, 0 }
 0x187   : > { %p1046_p0 = scmp.ge.s32.totalorder %s832_s26, 2  ;;  %s537_s16 = scalar_lea.sflag [#allocation4], %s536_s14 }
 0x189   : > { %p654_p1 = pnand %p1046_p0, %p1045_p11 }
 0x18b   : > { %p655_p2 = pneg %p654_p1 }
 0x18d   : > { %807 = dma.done.wait (%p655_p2), %s537_s16, 128  }
 0x18e   : > { %809 = vsyncadd (%p655_p2), %s537_s16, 4294967168  ;;  %s22_s26 = sadd.s32 1, %s832_s26   ;;  %s1047_s21 = smov %s816_s22 }
 0x18f   : > { %p19_p3 = scmp.ge.s32.totalorder %s22_s26, 4   ;;  %s1048_s22 = smov %s820_s23 }
 0x190   : > { %s1049_s23 = smov %s937_s11  ;;  %s1050_s24 = smov %s828_s25 }
 0x191   : > { %s1051_s25 = smov %s1053_s29  ;;  %21 = sbr.rel (!%p19_p3) target bundleno = 6 (0x6), region = 92 }
 0x196   :  { %542 = vsyncpa [#allocation3], 1 }
 0x197   :  { %544 = vsyncpa [#allocation3 + $0x1], 1 }
 0x198   :  { %545 = vsyncpa [#allocation4], 1 }
 0x199   :  { %547 = vsyncpa [#allocation4 + $0x1], 1 }

</bundles_post_ra>
